<compile_context>
chip_gen: v6e
topology: v6e:2x2x1
jax: 0.10.0
libtpu: 0.0.40
codegen_flags: <defaults>
</compile_context>

<pallas_src>
import functools

import jax
import jax.numpy as jnp
from jax.experimental import pallas as pl
from jax.experimental.pallas import tpu as pltpu


def cnn_kernel(emb_ref, wc_ref, bc_ref, wf_ref, bf_ref, out_ref,
               *, kh, stride, l_out):
    # emb_ref: (TB, L_pad, E) f32     wc_ref: (kh, E, C_pad) bf16
    # bc_ref:  (1, C_pad)    f32      wf_ref: (C_pad, O_pad) bf16
    # bf_ref:  (1, O_pad)    f32      out_ref: (TB, O_pad)   f32
    tb, l_pad, e = emb_ref.shape
    c_pad = wc_ref.shape[-1]
    emb = emb_ref[...]                                    # (TB, L_pad, E) f32

    # Convolution as kh tap-matmuls accumulated in f32:
    #   acc[b*L_out + t, c] = sum_j sum_e emb[b, t*stride + j, e] * W[j, e, c]
    acc = jnp.zeros((tb * l_out, c_pad), jnp.float32)
    for j in range(kh):                                   # kh is tiny & static
        if stride == 1:
            win = emb[:, j:j + l_out, :]                  # (TB, L_out, E)
        else:
            win = jax.lax.slice(
                emb, (0, j, 0),
                (tb, j + (l_out - 1) * stride + 1, e),
                (1, stride, 1))
        win = win.reshape(tb * l_out, e)                  # M = TB*L_out rows
        acc = acc + jnp.dot(win.astype(jnp.bfloat16), wc_ref[j],
                            preferred_element_type=jnp.float32)

    # Bias + ReLU (f32 on the VPU), then max-pool over the time axis.
    act = jnp.maximum(acc + bc_ref[...], 0.0)             # (TB*L_out, C_pad)
    pooled = jnp.max(act.reshape(tb, l_out, c_pad), axis=1)   # (TB, C_pad)

    # TODO(synk): Dropout(0.3) is identity in eval mode; training-mode masking
    #             would need pltpu.prng_* stochastic masks.
    out_ref[...] = (
        jnp.dot(pooled.astype(jnp.bfloat16), wf_ref[...],
                preferred_element_type=jnp.float32)
        + bf_ref[...]
    )


def cnn_forward(x, emb_table, conv_w, conv_b, fc_w, fc_b,
                *, kh, stride, padding, padding_idx):
    """x: (B, L) int32 token ids.  Returns (B, O) float32."""
    B, L = x.shape
    _, E = emb_table.shape
    C = conv_w.shape[0]
    O = fc_w.shape[0]

    LANE, SUB = 128, 8
    C_pad = pl.cdiv(C, LANE) * LANE                      # lane-dense channels
    O_pad = pl.cdiv(O, LANE) * LANE                      # lane-dense output

    # --- glue (plain JAX): embedding gather + zero padding along time ---
    # TODO(synk): fuse the gather in-kernel (scalar-prefetch token ids +
    #             pl.Element row index_map) to avoid the (B, L_pad, E) HBM
    #             round-trip at large B*L.
    table = emb_table.at[padding_idx].set(0.0)           # padding_idx row -> 0
    emb = table[x]                                        # (B, L, E)
    emb_padded = jnp.pad(emb, ((0, 0), (padding, padding), (0, 0)))
    L_pad = L + 2 * padding
    L_out = (L_pad - kh) // stride + 1

    # Batch tile: multiple of 8 sublanes; keep the double-buffered emb tile
    # well under the v7x scoped-VMEM budget (64 MiB physical / 32 MiB scoped).
    bytes_per_row = L_pad * E * 4                         # f32 emb per batch elem
    budget = 16 << 20
    tb_cap = max(SUB, (budget // (2 * bytes_per_row)) // SUB * SUB)
    TB = min(256, tb_cap, pl.cdiv(B, SUB) * SUB)
    B_pad = pl.cdiv(B, TB) * TB
    emb_padded = jnp.pad(emb_padded, ((0, B_pad - B), (0, 0), (0, 0)))
    emb_padded = emb_padded.astype(jnp.float32)

    # Conv2d weight (C, 1, kh, E) -> per-tap (kh, E, C_pad), channels lane-padded.
    wc = jnp.transpose(conv_w.reshape(C, kh, E), (1, 2, 0))         # (kh, E, C)
    wc = jnp.pad(wc, ((0, 0), (0, 0), (0, C_pad - C))).astype(jnp.bfloat16)
    bc = jnp.pad(conv_b, (0, C_pad - C)).reshape(1, C_pad).astype(jnp.float32)
    # Padded channels see zero weights + zero bias -> ReLU/max give 0, and their
    # fc rows are zero-padded too, so the padding never leaks into the output.
    wf = jnp.pad(jnp.transpose(fc_w), ((0, C_pad - C), (0, O_pad - O)))
    wf = wf.astype(jnp.bfloat16)                                    # (C_pad, O_pad)
    bf = jnp.pad(fc_b, (0, O_pad - O)).reshape(1, O_pad).astype(jnp.float32)

    kernel = functools.partial(cnn_kernel, kh=kh, stride=stride, l_out=L_out)
    out = pl.pallas_call(
        kernel,
        out_shape=jax.ShapeDtypeStruct((B_pad, O_pad), jnp.float32),
        grid_spec=pltpu.PrefetchScalarGridSpec(
            num_scalar_prefetch=0,
            grid=(B_pad // TB,),
            in_specs=[
                pl.BlockSpec((TB, L_pad, E), lambda b: (b, 0, 0)),   # emb tile
                pl.BlockSpec((kh, E, C_pad), lambda b: (0, 0, 0)),   # conv W
                pl.BlockSpec((1, C_pad), lambda b: (0, 0)),          # conv b
                pl.BlockSpec((C_pad, O_pad), lambda b: (0, 0)),      # fc W
                pl.BlockSpec((1, O_pad), lambda b: (0, 0)),          # fc b
            ],
            out_specs=pl.BlockSpec((TB, O_pad), lambda b: (b, 0)),
        ),
        compiler_params=pltpu.CompilerParams(
            dimension_semantics=("parallel",),       # shard batch over v7x's 2 TCs
            vmem_limit_bytes=32 << 20,
        ),
    )(emb_padded, wc, bc, wf, bf)
    return out[:B, :O]


def cnn_reference(x, emb_table, conv_w, conv_b, fc_w, fc_b,
                  *, kh, stride, padding, padding_idx):
    """Pure-JAX f32 reference for verification."""
    B, L = x.shape
    C = conv_w.shape[0]
    table = emb_table.at[padding_idx].set(0.0)
    emb = table[x]
    emb_padded = jnp.pad(emb, ((0, 0), (padding, padding), (0, 0)))
    L_pad = L + 2 * padding
    L_out = (L_pad - kh) // stride + 1
    wc = conv_w.reshape(C, -1)                                # (C, kh*E)
    outs = []
    for t in range(L_out):
        win = emb_padded[:, t * stride:t * stride + kh, :].reshape(B, -1)
        outs.append(win @ wc.T + conv_b)                      # (B, C)
    act = jnp.maximum(jnp.stack(outs, axis=-1), 0.0)          # (B, C, L_out)
    pooled = act.max(axis=-1)                                 # (B, C)
    return pooled @ fc_w.T + fc_b


if __name__ == "__main__":
    # hyper-params (small, consistent with the module)
    B, L = 2, 8
    vocab_size, emb_size = 30, 32
    padding_idx = 0
    output_size = 4
    output_channels = 16
    kernel_heights, stride, padding = 3, 1, 1

    key = jax.random.PRNGKey(0)
    k_emb, k_cw, k_cb, k_fw, k_fb, k_x = jax.random.split(key, 6)

    emb_table = jax.random.normal(k_emb, (vocab_size, emb_size), jnp.float32)
    conv_w = 0.1 * jax.random.normal(
        k_cw, (output_channels, 1, kernel_heights, emb_size), jnp.float32)
    conv_b = 0.1 * jax.random.normal(k_cb, (output_channels,), jnp.float32)
    fc_w = 0.1 * jax.random.normal(k_fw, (output_size, output_channels), jnp.float32)
    fc_b = 0.1 * jax.random.normal(k_fb, (output_size,), jnp.float32)

    x = jax.random.randint(k_x, (B, L), 0, vocab_size, jnp.int32)

    out = cnn_forward(x, emb_table, conv_w, conv_b, fc_w, fc_b,
                      kh=kernel_heights, stride=stride,
                      padding=padding, padding_idx=padding_idx)
    out = jax.block_until_ready(out)

    ref = cnn_reference(x, emb_table, conv_w, conv_b, fc_w, fc_b,
                        kh=kernel_heights, stride=stride,
                        padding=padding, padding_idx=padding_idx)
    assert out.shape == (B, output_size)
    # bf16 MXU inputs (f32 accumulate) -> relax tolerance vs the f32 reference.
    assert jnp.allclose(out, ref, atol=2e-2, rtol=2e-2), (out, ref)
    print("KERNEL_OK")
</pallas_src>

<mosaic_0001>
module attributes {stable_mosaic.version = 11 : i64} {
  func.func @cnn_kernel(%arg0: i32, %arg1: memref<8x10x32xf32, #tpu.memory_space<vmem>>, %arg2: memref<3x32x128xbf16, #tpu.memory_space<vmem>>, %arg3: memref<1x128xf32, #tpu.memory_space<vmem>>, %arg4: memref<128x128xbf16, #tpu.memory_space<vmem>>, %arg5: memref<1x128xf32, #tpu.memory_space<vmem>>, %arg6: memref<8x128xf32, #tpu.memory_space<vmem>>) attributes {dimension_semantics = [#tpu.dimension_semantics<parallel>], iteration_bounds = array<i64: 1>, scalar_prefetch = 0 : i64, scratch_operands = 0 : i64, tpu.core_type = #tpu.core_type<tc>, window_params = [{transform_indices = @transform_0, window_bounds = array<i64: 8, 10, 32>}, {pipeline_mode = #tpu.pipeline_mode<synchronous>, transform_indices = @transform_1, window_bounds = array<i64: 3, 32, 128>}, {pipeline_mode = #tpu.pipeline_mode<synchronous>, transform_indices = @transform_2, window_bounds = array<i64: 1, 128>}, {pipeline_mode = #tpu.pipeline_mode<synchronous>, transform_indices = @transform_3, window_bounds = array<i64: 128, 128>}, {pipeline_mode = #tpu.pipeline_mode<synchronous>, transform_indices = @transform_4, window_bounds = array<i64: 1, 128>}, {transform_indices = @transform_5, window_bounds = array<i64: 8, 128>}]} {
    %c0 = arith.constant 0 : index
    %c0_0 = arith.constant 0 : index
    %c0_1 = arith.constant 0 : index
    %0 = vector.load %arg1[%c0, %c0_0, %c0_1] : memref<8x10x32xf32, #tpu.memory_space<vmem>>, vector<8x10x32xf32>
    %cst = arith.constant 0.000000e+00 : f32
    %1 = vector.broadcast %cst : f32 to vector<64x128xf32>
    %2 = vector.extract_strided_slice %0 {offsets = [0, 0, 0], sizes = [8, 8, 32], strides = [1, 1, 1]} : vector<8x10x32xf32> to vector<8x8x32xf32>
    %3 = vector.shape_cast %2 : vector<8x8x32xf32> to vector<64x32xf32>
    %4 = arith.truncf %3 : vector<64x32xf32> to vector<64x32xbf16>
    %c0_2 = arith.constant 0 : index
    %c0_3 = arith.constant 0 : index
    %c0_4 = arith.constant 0 : index
    %5 = vector.load %arg2[%c0_2, %c0_3, %c0_4] : memref<3x32x128xbf16, #tpu.memory_space<vmem>>, vector<1x32x128xbf16>
    %6 = vector.shape_cast %5 : vector<1x32x128xbf16> to vector<32x128xbf16>
    %cst_5 = arith.constant dense<0.000000e+00> : vector<64x128xf32>
    %7 = tpu.matmul %4, %6, %cst_5 {dimension_numbers = #tpu.dot_dimension_numbers<[1], [0], [0], [1], [0, 0, 1, 1], [], []>} : vector<64x32xbf16>, vector<32x128xbf16>, vector<64x128xf32> -> vector<64x128xf32>
    %8 = arith.addf %1, %7 : vector<64x128xf32>
    %9 = vector.extract_strided_slice %0 {offsets = [0, 1, 0], sizes = [8, 8, 32], strides = [1, 1, 1]} : vector<8x10x32xf32> to vector<8x8x32xf32>
    %10 = vector.shape_cast %9 : vector<8x8x32xf32> to vector<64x32xf32>
    %11 = arith.truncf %10 : vector<64x32xf32> to vector<64x32xbf16>
    %c1 = arith.constant 1 : index
    %c0_6 = arith.constant 0 : index
    %c0_7 = arith.constant 0 : index
    %12 = vector.load %arg2[%c1, %c0_6, %c0_7] : memref<3x32x128xbf16, #tpu.memory_space<vmem>>, vector<1x32x128xbf16>
    %13 = vector.shape_cast %12 : vector<1x32x128xbf16> to vector<32x128xbf16>
    %cst_8 = arith.constant dense<0.000000e+00> : vector<64x128xf32>
    %14 = tpu.matmul %11, %13, %cst_8 {dimension_numbers = #tpu.dot_dimension_numbers<[1], [0], [0], [1], [0, 0, 1, 1], [], []>} : vector<64x32xbf16>, vector<32x128xbf16>, vector<64x128xf32> -> vector<64x128xf32>
    %15 = arith.addf %8, %14 : vector<64x128xf32>
    %16 = vector.extract_strided_slice %0 {offsets = [0, 2, 0], sizes = [8, 8, 32], strides = [1, 1, 1]} : vector<8x10x32xf32> to vector<8x8x32xf32>
    %17 = vector.shape_cast %16 : vector<8x8x32xf32> to vector<64x32xf32>
    %18 = arith.truncf %17 : vector<64x32xf32> to vector<64x32xbf16>
    %c2 = arith.constant 2 : index
    %c0_9 = arith.constant 0 : index
    %c0_10 = arith.constant 0 : index
    %19 = vector.load %arg2[%c2, %c0_9, %c0_10] : memref<3x32x128xbf16, #tpu.memory_space<vmem>>, vector<1x32x128xbf16>
    %20 = vector.shape_cast %19 : vector<1x32x128xbf16> to vector<32x128xbf16>
    %cst_11 = arith.constant dense<0.000000e+00> : vector<64x128xf32>
    %21 = tpu.matmul %18, %20, %cst_11 {dimension_numbers = #tpu.dot_dimension_numbers<[1], [0], [0], [1], [0, 0, 1, 1], [], []>} : vector<64x32xbf16>, vector<32x128xbf16>, vector<64x128xf32> -> vector<64x128xf32>
    %22 = arith.addf %15, %21 : vector<64x128xf32>
    %c0_12 = arith.constant 0 : index
    %c0_13 = arith.constant 0 : index
    %23 = vector.load %arg3[%c0_12, %c0_13] : memref<1x128xf32, #tpu.memory_space<vmem>>, vector<1x128xf32>
    %24 = vector.broadcast %23 : vector<1x128xf32> to vector<64x128xf32>
    %25 = arith.addf %22, %24 : vector<64x128xf32>
    %cst_14 = arith.constant 0.000000e+00 : f32
    %26 = vector.broadcast %cst_14 : f32 to vector<64x128xf32>
    %27 = arith.maximumf %25, %26 : vector<64x128xf32>
    %28 = vector.shape_cast %27 : vector<64x128xf32> to vector<8x8x128xf32>
    %cst_15 = arith.constant dense<0xFF800000> : vector<8x128xf32>
    %29 = vector.multi_reduction <maximumf>, %28, %cst_15 [1] : vector<8x8x128xf32> to vector<8x128xf32>
    %30 = arith.truncf %29 : vector<8x128xf32> to vector<8x128xbf16>
    %c0_16 = arith.constant 0 : index
    %c0_17 = arith.constant 0 : index
    %31 = vector.load %arg4[%c0_16, %c0_17] : memref<128x128xbf16, #tpu.memory_space<vmem>>, vector<128x128xbf16>
    %cst_18 = arith.constant dense<0.000000e+00> : vector<8x128xf32>
    %32 = tpu.matmul %30, %31, %cst_18 {dimension_numbers = #tpu.dot_dimension_numbers<[1], [0], [0], [1], [0, 0, 1, 1], [], []>} : vector<8x128xbf16>, vector<128x128xbf16>, vector<8x128xf32> -> vector<8x128xf32>
    %c0_19 = arith.constant 0 : index
    %c0_20 = arith.constant 0 : index
    %33 = vector.load %arg5[%c0_19, %c0_20] : memref<1x128xf32, #tpu.memory_space<vmem>>, vector<1x128xf32>
    %34 = vector.broadcast %33 : vector<1x128xf32> to vector<8x128xf32>
    %35 = arith.addf %32, %34 : vector<8x128xf32>
    %c0_21 = arith.constant 0 : index
    %c0_22 = arith.constant 0 : index
    %36 = vector.load %arg6[%c0_21, %c0_22] : memref<8x128xf32, #tpu.memory_space<vmem>>, vector<8x128xf32>
    tpu.vector_store %arg6[%c0_21, %c0_22], %35 {strides = array<i32>} : memref<8x128xf32, #tpu.memory_space<vmem>>, vector<8x128xf32>,
    return
  }
  func.func @transform_0(%arg0: i32) -> (i32, i32, i32) {
    %c0_i32 = arith.constant 0 : i32
    %c0_i32_0 = arith.constant 0 : i32
    %c0_i32_1 = arith.constant 0 : i32
    return %arg0, %c0_i32, %c0_i32_0 : i32, i32, i32
  }
  func.func @transform_1(%arg0: i32) -> (i32, i32, i32) {
    %c0_i32 = arith.constant 0 : i32
    %c0_i32_0 = arith.constant 0 : i32
    %c0_i32_1 = arith.constant 0 : i32
    %c0_i32_2 = arith.constant 0 : i32
    return %c0_i32, %c0_i32_0, %c0_i32_1 : i32, i32, i32
  }
  func.func @transform_2(%arg0: i32) -> (i32, i32) {
    %c0_i32 = arith.constant 0 : i32
    %c0_i32_0 = arith.constant 0 : i32
    %c0_i32_1 = arith.constant 0 : i32
    return %c0_i32, %c0_i32_0 : i32, i32
  }
  func.func @transform_3(%arg0: i32) -> (i32, i32) {
    %c0_i32 = arith.constant 0 : i32
    %c0_i32_0 = arith.constant 0 : i32
    %c0_i32_1 = arith.constant 0 : i32
    return %c0_i32, %c0_i32_0 : i32, i32
  }
  func.func @transform_4(%arg0: i32) -> (i32, i32) {
    %c0_i32 = arith.constant 0 : i32
    %c0_i32_0 = arith.constant 0 : i32
    %c0_i32_1 = arith.constant 0 : i32
    return %c0_i32, %c0_i32_0 : i32, i32
  }
  func.func @transform_5(%arg0: i32) -> (i32, i32) {
    %c0_i32 = arith.constant 0 : i32
    %c0_i32_0 = arith.constant 0 : i32
    return %arg0, %c0_i32 : i32, i32
  }
}

</mosaic_0001>

<bundles_post_ra>
// kernel: tpu_custom_call.1
= control target key start
LH: loop header
LB: loop body
LE: loop exit
PB: predicated region body
PF: predicated region fallthrough
CT: control target
= control target key end

     0   :  { %vm62_vm0 = vcmask 1046528   ;;  %vm116_vm1 = vcmask 261120   ;;  %vm283_vm2 = vcmask 1045504   ;;  %s1013_s0 = inlined_call_operand.vmem [shape: f32[8,10,32], index: 0, kind: input, shape index: {}]   ;;  %s1014_s1 = inlined_call_operand.vmem [shape: bf16[3,32,128], index: 1, kind: input, shape index: {}]   ;;  %s1015_s2 = inlined_call_operand.vmem [shape: f32[1,128], index: 2, kind: input, shape index: {}]   ;;  %s1016_s3 = inlined_call_operand.vmem [shape: bf16[128,128], index: 3, kind: input, shape index: {}]   ;;  %s1017_s4 = inlined_call_operand.vmem [shape: f32[1,128], index: 4, kind: input, shape index: {}]   ;;  %s1018_s5 = inlined_call_operand.hbm [shape: f32[8,128], index: 5, kind: output, shape index: {}]  }
   0x1   :  { %v781_v0 = vld [vmem:[%s1014_s1 + $0x18] sm:$0xff]   ;;  %v782_v1 = vld [vmem:[%s1014_s1 + $0x8] sm:$0xff]   ;;  %v783_v2 = vld [vmem:[%s1014_s1 + $0x10] sm:$0xff]  }
   0x2   :  { %722 = vmatprep.subr.bf16.mxu0 %v781_v0  ;;  %734 = vmatprep.subr.bf16.mxu1 %v782_v1  ;;  %v784_v3 = vld [vmem:[%s1014_s1] sm:$0xff]   ;;  %v870_v5 = vld [vmem:[%s1013_s0 + $0x8] sm:$0x3]  ;;  %v875_v6 = vld [vmem:[%s1013_s0 + $0x10] sm:$0xff] }
   0x3   :  { %723 = vmatpush3.bf16.msra.mxu0 %v781_v0  ;;  %735 = vmatpush3.bf16.msra.mxu1 %v782_v1  ;;  %v865_v4 = vld [vmem:[%s1013_s0] sm:$0xff]  ;;  %v880_v7 = vld [vmem:[%s1013_s0 + $0x18] sm:$0x3]  ;;  %v64_v9 = vrot.slane %v870_v5, 1  ;;  %v66_v10 = vrot.slane %v875_v6, 1  ;;  %v894_v13 = vld [vmem:[%s1013_s0 + $0x30] sm:$0xff] }
   0x4   :  { %724 = vmatprep.subr.bf16.mxu0 %v783_v2  ;;  %736 = vmatprep.subr.bf16.mxu1 %v784_v3  ;;  %v63_v8 = vrot.slane %v865_v4, 1  ;;  %v67_v11 = vrot.slane %v880_v7, 1  ;;  %v889_v12 = vld [vmem:[%s1013_s0 + $0x20] sm:$0xff]  ;;  %v38_v15 = vpack.c.bf16 %v875_v6, %v865_v4  ;;  %v902_v16 = vld [vmem:[%s1013_s0 + $0x28] sm:$0x3]  ;;  %v72_v19 = vrot.slane %v894_v13, 1 }
   0x5   :  { %v907_v17 = vld [vmem:[%s1013_s0 + $0x38] sm:$0x3]  ;;  %v69_v18 = vrot.slane %v889_v12, 1  ;;  %v284_v21 = vrot.slane %v865_v4, 2  ;;  %v70_v22 = vrot.slane %v902_v16, 1  ;;  %v785_v24 = vld [vmem:[%s1014_s1 + $0x28] sm:$0xff]   ;;  %v39_v32 = vpack.c.bf16 %v894_v13, %v889_v12 }
   0x6   :  { %v65_v14 = vsel %vm62_vm0, %v63_v8, %v64_v9  ;;  %v68_v20 = vsel %vm62_vm0, %v66_v10, %v67_v11  ;;  %v73_v23 = vrot.slane %v907_v17, 1  ;;  %v285_v26 = vrot.slane %v870_v5, 2  ;;  %738 = vmatprep.mubr.msk.bf16.mxu1 %vm116_vm1, %v38_v15  ;;  %v30_v29 = vld [vmem:[%s1013_s0 + $0x40] sm:$0xff]  ;;  %v31_v33 = vld [vmem:[%s1013_s0 + $0x48] sm:$0x3]  ;;  %v32_v34 = vld [vmem:[%s1013_s0 + $0x50] sm:$0xff] }
   0x7   :  { %725 = vmatpush3.bf16.msra.mxu0 %v783_v2  ;;  %737 = vmatpush3.bf16.msra.mxu1 %v784_v3  ;;  %v95_v25 = vpack.c.bf16 %v68_v20, %v65_v14  ;;  %v287_v27 = vrot.slane %v875_v6, 2  ;;  %v288_v28 = vrot.slane %v880_v7, 2  ;;  %v71_v30 = vsel %vm62_vm0, %v69_v18, %v70_v22  ;;  %v33_v35 = vld [vmem:[%s1013_s0 + $0x58] sm:$0x3]  ;;  %v34_v41 = vld [vmem:[%s1013_s0 + $0x60] sm:$0xff]  ;;  %v36_v44 = vld [vmem:[%s1013_s0 + $0x70] sm:$0xff] }
   0x8   :  { %v74_v31 = vsel %vm62_vm0, %v72_v19, %v73_v23  ;;  %746 = vmatprep.subr.bf16.mxu0 %v785_v24  ;;  %v75_v36 = vrot.slane %v30_v29, 1  ;;  %v76_v38 = vrot.slane %v31_v33, 1  ;;  %v78_v39 = vrot.slane %v32_v34, 1  ;;  %v35_v42 = vld [vmem:[%s1013_s0 + $0x68] sm:$0x3]  ;;  %v786_v48 = vld [vmem:[%s1014_s1 + $0x20] sm:$0xff]  }
   0x9   :  { %726 = vmatprep.mubr.msk.bf16.mxu0 %vm116_vm1, %v95_v25  ;;  %v96_v37 = vpack.c.bf16 %v74_v31, %v71_v30  ;;  %v79_v40 = vrot.slane %v33_v35, 1  ;;  %v40_v43 = vpack.c.bf16 %v32_v34, %v30_v29  ;;  %v37_v45 = vld [vmem:[%s1013_s0 + $0x78] sm:$0x3]  ;;  %v81_v46 = vrot.slane %v34_v41, 1 }
   0xa   :  { %739 = vmatmul.mubr.msk.bf16.vlgmr.msra.gmra.mxu1 %vm116_vm1, %v39_v32  ;;  %v82_v47 = vrot.slane %v35_v42, 1  ;;  %v77_v49 = vsel %vm62_vm0, %v75_v36, %v76_v38  ;;  %v84_v51 = vrot.slane %v36_v44, 1  ;;  %v85_v52 = vrot.slane %v37_v45, 1 }
   0xb   :  { %727 = vmatmul.mubr.msk.bf16.vlgmr.msra.gmra.mxu0 %vm116_vm1, %v96_v37  ;;  %v80_v50 = vsel %vm62_vm0, %v78_v39, %v79_v40  ;;  %v290_v53 = vrot.slane %v889_v12, 2  ;;  %742 = vmatprep.mubr.msk.bf16.mxu1 %vm116_vm1, %v40_v43  ;;  %v286_v57 = vsel %vm283_vm2, %v284_v21, %v285_v26  ;;  %v289_v58 = vsel %vm283_vm2, %v287_v27, %v288_v28 }
   0xc   :  { %747 = vmatpush3.bf16.msra.mxu0 %v785_v24  ;;  %v97_v54 = vpack.c.bf16 %v80_v50, %v77_v49  ;;  %v83_v55 = vsel %vm62_vm0, %v81_v46, %v82_v47  ;;  %v86_v56 = vsel %vm62_vm0, %v84_v51, %v85_v52  ;;  %v291_v59 = vrot.slane %v902_v16, 2 }
   0xd   :  { %748 = vmatprep.subr.bf16.mxu0 %v786_v48  ;;  %v293_v60 = vrot.slane %v894_v13, 2  ;;  %v41_v61 = vpack.c.bf16 %v36_v44, %v34_v41  ;;  %v294_v62 = vrot.slane %v907_v17, 2  ;;  %v98_v63 = vpack.c.bf16 %v86_v56, %v83_v55 }
   0xe   :  { %730 = vmatprep.mubr.msk.bf16.mxu0 %vm116_vm1, %v97_v54  ;;  %v296_v0 = vrot.slane %v30_v29, 2  ;;  %v297_v1 = vrot.slane %v31_v33, 2  ;;  %v316_v2 = vpack.c.bf16 %v289_v58, %v286_v57  ;;  %v299_v3 = vrot.slane %v32_v34, 2 }
   0xf   :  { %v300_v4 = vrot.slane %v33_v35, 2 }
  0x10   :  { %749 = vmatpush3.bf16.msra.mxu0 %v786_v48 }
  0x12   :  { %743 = vmatmul.mubr.msk.bf16.gmra.mxu1 %vm116_vm1, %v41_v61 }
  0x13   :  { %731 = vmatmul.mubr.msk.bf16.gmra.mxu0 %vm116_vm1, %v98_v63 }
  0x14   :  { %10 = vsyncpa [#allocation3], 0  ;;  %750 = vmatprep.mubr.msk.bf16.mxu0 %vm116_vm1, %v316_v2  ;;  %v292_v5 = vsel %vm283_vm2, %v290_v53, %v291_v59  ;;  %v295_v6 = vsel %vm283_vm2, %v293_v60, %v294_v62  ;;  %v298_v7 = vsel %vm283_vm2, %v296_v0, %v297_v1  ;;  %v301_v8 = vsel %vm283_vm2, %v299_v3, %v300_v4  ;;  %v787_v18 = vld [vmem:[%s1016_s3 + $0x38] sm:$0xff]   ;;  %v788_v20 = vld [vmem:[%s1016_s3 + $0x30] sm:$0xff]   ;;  %s819_s28 = smov [#allocation2]  }
  0x15   :  { %v317_v9 = vpack.c.bf16 %v295_v6, %v292_v5  ;;  %v302_v10 = vrot.slane %v34_v41, 2  ;;  %v318_v11 = vpack.c.bf16 %v301_v8, %v298_v7  ;;  %v303_v12 = vrot.slane %v35_v42, 2  ;;  %v789_v21 = vld [vmem:[%s1016_s3 + $0x28] sm:$0xff]   ;;  %v790_v22 = vld [vmem:[%s1016_s3 + $0x20] sm:$0xff]   ;;  %v791_v23 = vld [vmem:[%s1016_s3 + $0x18] sm:$0xff]   ;;  %s651_s29 = sshll.u32 %s819_s28, 4  ;;  %s652_s29 = int_to_ptr.vmem [resolvable:$true] %s651_s29 }
  0x16   :  { %v305_v13 = vrot.slane %v36_v44, 2  ;;  %v306_v14 = vrot.slane %v37_v45, 2  ;;  %v817_v19 = vmov 0.0   ;;  %v792_v24 = vld [vmem:[%s1016_s3 + $0x10] sm:$0xff]   ;;  %v793_v25 = vld [vmem:[%s1016_s3 + $0x8] sm:$0xff]   ;;  %v794_v26 = vld [vmem:[%s1016_s3] sm:$0xff]   ;;  %p800_p1 = scmp.lt.s32.totalorder %s652_s29, %s652_s29 }
  0x17   :  { %v304_v15 = vsel %vm283_vm2, %v302_v10, %v303_v12  ;;  %758 = vmatprep.subr.bf16.mxu1 %v817_v19  ;;  %vm818_vm3 = vmmov 0   ;;  %v685_v42 = vld [vmem:[%s1015_s2] ss:$0 sm:$0xff]  ;;  %vm540_vm4 = vcmask 1041409   ;;  %vm542_vm5 = vcmask 1042434   ;;  %s795_s30 = scalar_lea.vmem %s652_s29, 128 }
  0x18   :  { %v307_v16 = vsel %vm283_vm2, %v305_v13, %v306_v14  ;;  %759 = vmatpush3.bf16.msra.mxu1 %v787_v18  ;;  %774 = vmatprep.mubr.msk.bf16.mxu1 %vm818_vm3, %v817_v19  ;;  %vm544_vm6 = vcmask 1043459   ;;  %vm546_vm7 = vcmask 1044484   ;;  %vm548_vm8 = vcmask 1045509   ;;  %p796_p0 = scmp.ne.s32.totalorder %s652_s29, %s795_s30  ;;  %p801_p2 = scmp.lt.s32.totalorder %s795_s30, %s795_s30 }
  0x19   :  { %v319_v17 = vpack.c.bf16 %v307_v16, %v304_v15  ;;  %760 = vmatprep.subr.bf16.mxu1 %v817_v19  ;;  %vm550_vm9 = vcmask 1046534   ;;  %vm552_vm10 = vcmask 1047559  }
  0x1a   :  { %p802_p3 = por %p801_p2, %p800_p1 }
  0x1b   :  { %751 = vmatmul.mubr.msk.bf16.vlgmr.msra.gmra.mxu0 %vm116_vm1, %v317_v9 }
  0x1c   :  { %754 = vmatprep.mubr.msk.bf16.mxu0 %vm116_vm1, %v318_v11  ;;  %761 = vmatpush3.bf16.msra.mxu1 %v788_v20  ;;  %p803_p4 = pnand %p802_p3, %p796_p0 }
  0x1d   :  { %762 = vmatprep.subr.bf16.mxu1 %v817_v19 }
  0x20   :  { %763 = vmatpush3.bf16.msra.mxu1 %v789_v21 }
  0x21   :  { %764 = vmatprep.subr.bf16.mxu1 %v817_v19 }
  0x23   :  { %755 = vmatmul.mubr.msk.bf16.gmra.mxu0 %vm116_vm1, %v319_v17 }
  0x24   :  { %765 = vmatpush3.bf16.msra.mxu1 %v790_v22 }
  0x25   :  { %766 = vmatprep.subr.bf16.mxu1 %v817_v19 }
  0x28   :  { %767 = vmatpush3.bf16.msra.mxu1 %v791_v23 }
  0x29   :  { %768 = vmatprep.subr.bf16.mxu1 %v817_v19 }
  0x2c   :  { %769 = vmatpush3.bf16.msra.mxu1 %v792_v24 }
  0x2d   :  { %770 = vmatprep.subr.bf16.mxu1 %v817_v19 }
  0x30   :  { %771 = vmatpush3.bf16.msra.mxu1 %v793_v25 }
  0x31   :  { %772 = vmatprep.subr.bf16.mxu1 %v817_v19 }
  0x34   :  { %773 = vmatpush3.bf16.msra.mxu1 %v794_v26 }
  0xca   :  { %v740_v27 = vpop.f32.mrf.mxu1 }
  0xcb   :  { %v728_v28 = vpop.f32.mrf.mxu0 }
  0xcc   :  { %v252_v30 = vpop.f32.mrf.mxu1  ;;  %v261_v39 = vadd.f32 %v740_v27, %v728_v28 }
  0xcd   :  { %v163_v29 = vpop.f32.mrf.mxu0 }
  0xce   :  { %v741_v33 = vpop.f32.mrf.mxu1  ;;  %v253_v43 = vadd.f32 %v252_v30, %v163_v29 }
  0xcf   :  { %v729_v31 = vpop.f32.mrf.mxu0 }
  0xd0   :  { %v255_v36 = vpop.f32.mrf.mxu1  ;;  %v264_v46 = vadd.f32 %v741_v33, %v729_v31 }
  0xd1   :  { %v166_v32 = vpop.f32.mrf.mxu0 }
  0xd2   :  { %v744_v40 = vpop.f32.mrf.mxu1  ;;  %v256_v51 = vadd.f32 %v255_v36, %v166_v32 }
  0xd3   :  { %v732_v34 = vpop.f32.mrf.mxu0 }
  0xd4   :  { %v268_v47 = vpop.f32.mrf.mxu1  ;;  %v277_v61 = vadd.f32 %v744_v40, %v732_v34 }
  0xd5   :  { %v179_v35 = vpop.f32.mrf.mxu0 }
  0xd6   :  { %v745_v56 = vpop.f32.mrf.mxu1  ;;  %v269_v3 = vadd.f32 %v268_v47, %v179_v35 }
  0xd7   :  { %v733_v37 = vpop.f32.mrf.mxu0 }
  0xd8   :  { %v271_v6 = vpop.f32.mrf.mxu1  ;;  %v280_v11 = vadd.f32 %v745_v56, %v733_v37 }
  0xd9   :  { %v182_v38 = vpop.f32.mrf.mxu0 }
  0xda   :  { %v272_v19 = vadd.f32 %v271_v6, %v182_v38 }
  0xdb   :  { %v752_v41 = vpop.f32.mrf.mxu0 }
  0xdc   :  { %v416_v44 = vadd.f32 %v752_v41, %v261_v39 }
  0xdd   :  { %v383_v45 = vpop.f32.mrf.mxu0 }
  0xde   :  { %v431_v48 = vadd.f32 %v685_v42, %v416_v44  ;;  %v414_v49 = vadd.f32 %v383_v45, %v253_v43 }
  0xdf   :  { %v753_v50 = vpop.f32.mrf.mxu0 }
  0xe0   :  { %v439_v52 = vmax.f32 %v431_v48, 0.0  ;;  %v429_v53 = vadd.f32 %v685_v42, %v414_v49  ;;  %v417_v54 = vadd.f32 %v753_v50, %v264_v46 }
  0xe1   :  { %v386_v55 = vpop.f32.mrf.mxu0 }
  0xe2   :  { %v457_v57 = vrot.slane %v439_v52, 4  ;;  %v437_v58 = vmax.f32 %v429_v53, 0.0  ;;  %v432_v59 = vadd.f32 %v685_v42, %v417_v54  ;;  %v415_v60 = vadd.f32 %v386_v55, %v256_v51 }
  0xe3   :  { %v756_v62 = vpop.f32.mrf.mxu0 }
  0xe4   :  { %v458_v63 = vmax.f32 %v439_v52, %v457_v57  ;;  %v445_v0 = vrot.slane %v437_v58, 4  ;;  %v440_v1 = vmax.f32 %v432_v59, 0.0  ;;  %v430_v2 = vadd.f32 %v685_v42, %v415_v60 }
  0xe5   :  { %v420_v4 = vadd.f32 %v756_v62, %v277_v61  ;;  %v399_v5 = vpop.f32.mrf.mxu0 }
  0xe6   :  { %v459_v7 = vrot.slane %v458_v63, 2  ;;  %v446_v8 = vmax.f32 %v437_v58, %v445_v0  ;;  %v463_v9 = vrot.slane %v440_v1, 4  ;;  %v438_v10 = vmax.f32 %v430_v2, 0.0 }
  0xe7   :  { %v435_v12 = vadd.f32 %v685_v42, %v420_v4  ;;  %v418_v13 = vadd.f32 %v399_v5, %v269_v3  ;;  %v757_v14 = vpop.f32.mrf.mxu0 }
  0xe8   :  { %v460_v15 = vmax.f32 %v458_v63, %v459_v7  ;;  %v447_v16 = vrot.slane %v446_v8, 2  ;;  %v464_v17 = vmax.f32 %v440_v1, %v463_v9  ;;  %v451_v18 = vrot.slane %v438_v10, 4 }
  0xe9   :  { %v443_v20 = vmax.f32 %v435_v12, 0.0  ;;  %v433_v21 = vadd.f32 %v685_v42, %v418_v13  ;;  %v421_v22 = vadd.f32 %v757_v14, %v280_v11  ;;  %v402_v23 = vpop.f32.mrf.mxu0 }
  0xea   :  { %v448_v24 = vmax.f32 %v446_v8, %v447_v16  ;;  %v465_v25 = vrot.slane %v464_v17, 2  ;;  %v452_v26 = vmax.f32 %v438_v10, %v451_v18  ;;  %v419_v30 = vadd.f32 %v402_v23, %v272_v19 }
  0xeb   :  { %v481_v27 = vrot.slane %v443_v20, 4  ;;  %v441_v28 = vmax.f32 %v433_v21, 0.0  ;;  %v436_v29 = vadd.f32 %v685_v42, %v421_v22  ;;  %v461_v31 = vrot.slane %v460_v15, 1 }
  0xec   :  { %v449_v32 = vrot.slane %v448_v24, 1  ;;  %v466_v33 = vmax.f32 %v464_v17, %v465_v25  ;;  %v453_v34 = vrot.slane %v452_v26, 2  ;;  %v434_v39 = vadd.f32 %v685_v42, %v419_v30 }
  0xed   :  { %v482_v35 = vmax.f32 %v443_v20, %v481_v27  ;;  %v469_v36 = vrot.slane %v441_v28, 4  ;;  %v444_v37 = vmax.f32 %v436_v29, 0.0  ;;  %v462_v46 = vmax.f32 %v460_v15, %v461_v31 }
  0xee   :  { %v450_v38 = vmax.f32 %v448_v24, %v449_v32  ;;  %v454_v40 = vmax.f32 %v452_v26, %v453_v34  ;;  %v442_v45 = vmax.f32 %v434_v39, 0.0  ;;  %v467_v47 = vrot.slane %v466_v33, 1 }
  0xef   :  { %v483_v41 = vrot.slane %v482_v35, 2  ;;  %v470_v43 = vmax.f32 %v441_v28, %v469_v36  ;;  %v487_v44 = vrot.slane %v444_v37, 4  ;;  %v495_v58 = vpack.c.bf16 %v462_v46, %v462_v46  ;;  %v686_v28 = vld [vmem:[%s1017_s4] ss:$0 sm:$0xff] }
  0xf0   :  { %v455_v48 = vrot.slane %v454_v40, 1  ;;  %v475_v52 = vrot.slane %v442_v45, 4  ;;  %v493_v53 = vpack.c.bf16 %v450_v38, %v450_v38  ;;  %v468_v42 = vmax.f32 %v466_v33, %v467_v47 }
  0xf1   :  { %v484_v49 = vmax.f32 %v482_v35, %v483_v41  ;;  %v471_v50 = vrot.slane %v470_v43, 2  ;;  %v488_v51 = vmax.f32 %v444_v37, %v487_v44  ;;  %v534_v7 = vunpack.c.l.b16 %v495_v58 }
  0xf2   :  { %v456_v54 = vmax.f32 %v454_v40, %v455_v48  ;;  %v476_v57 = vmax.f32 %v442_v45, %v475_v52  ;;  %v532_v0 = vunpack.c.l.b16 %v493_v53  ;;  %v496_v5 = vpack.c.bf16 %v468_v42, %v468_v42 }
  0xf3   :  { %v472_v55 = vmax.f32 %v470_v43, %v471_v50  ;;  %v489_v56 = vrot.slane %v488_v51, 2  ;;  %v485_v60 = vrot.slane %v484_v49, 1 }
  0xf4   :  { %v494_v59 = vpack.c.bf16 %v456_v54, %v456_v54  ;;  %v477_v63 = vrot.slane %v476_v57, 2  ;;  %v535_v13 = vunpack.c.l.b16 %v496_v5 }
  0xf5   :  { %v473_v61 = vrot.slane %v472_v55, 1  ;;  %v490_v62 = vmax.f32 %v488_v51, %v489_v56  ;;  %v486_v8 = vmax.f32 %v484_v49, %v485_v60 }
  0xf6   :  { %v533_v1 = vunpack.c.l.b16 %v494_v59  ;;  %v478_v4 = vmax.f32 %v476_v57, %v477_v63 }
  0xf7   :  { %v474_v2 = vmax.f32 %v472_v55, %v473_v61  ;;  %v491_v3 = vrot.slane %v490_v62, 1  ;;  %v499_v15 = vpack.c.bf16 %v486_v8, %v486_v8 }
  0xf8   :  { %v541_v6 = vsel %vm540_vm4, %v533_v1, %v532_v0  ;;  %v479_v11 = vrot.slane %v478_v4, 1 }
  0xf9   :  { %v497_v9 = vpack.c.bf16 %v474_v2, %v474_v2  ;;  %v492_v10 = vmax.f32 %v490_v62, %v491_v3  ;;  %v543_v12 = vsel %vm542_vm5, %v534_v7, %v541_v6  ;;  %v538_v21 = vunpack.c.l.b16 %v499_v15 }
  0xfa   :  { %v480_v14 = vmax.f32 %v478_v4, %v479_v11  ;;  %v545_v17 = vsel %vm544_vm6, %v535_v13, %v543_v12 }
  0xfb   :  { %v536_v16 = vunpack.c.l.b16 %v497_v9  ;;  %v500_v18 = vpack.c.bf16 %v492_v10, %v492_v10 }
  0xfc   :  { %v498_v19 = vpack.c.bf16 %v480_v14, %v480_v14 }
  0xfd   :  { %v547_v22 = vsel %vm546_vm7, %v536_v16, %v545_v17  ;;  %v539_v23 = vunpack.c.l.b16 %v500_v18 }
  0xfe   :  { %v537_v20 = vunpack.c.l.b16 %v498_v19 }
 0x100   :  { %v549_v24 = vsel %vm548_vm8, %v537_v20, %v547_v22 }
 0x101   :  { %v551_v25 = vsel %vm550_vm9, %v538_v21, %v549_v24 }
 0x102   :  { %v553_v26 = vsel %vm552_vm10, %v539_v23, %v551_v25 }
 0x103   :  { %v554_v27 = vpack.c.b16 %v553_v26, %v553_v26 }
 0x105   :  { %775 = vmatmul.mubr.bf16.vlgmr.msra.gmra.mxu1 %v554_v27 }
 0x1c5   :  { %v638_v29 = vpop.f32.mrf.mxu1 }
 0x1c6   :  { %v639_v30 = vadd.f32 %v686_v28, %v638_v29 }
 0x1c7   :  { %v776_v31 = vpop.f32.mrf.mxu1 }
 0x1c8   :  { %644 = vst [vmem:[#allocation2] sm:$0xff] %v639_v30 }
 0x1c9   :  { %v641_v32 = vpop.f32.mrf.mxu1 }
 0x1ca   :  { %806 = shalt.err (!%p803_p4)
}
 0x1cb   :  { %654 = dma.vmem_to_hbm [thread:$0]  %s652_s29, 128, %s1018_s5, [#allocation3]   ;;  %v777_v33 = vpop.f32.mrf.mxu1 }
 0x1cc   :  { %815 = dma.done.wait [#allocation3], 128  }
 0x1cd   :  { %816 = vsyncadd [#allocation3], 4294967168 }
 0x1ce   :  { %658 = vsyncpa [#allocation3], 1 }

</bundles_post_ra>
